<compile_context>
chip_gen: v6e
topology: v6e:2x2x1
jax: 0.10.0
libtpu: 0.0.40
codegen_flags: <defaults>
</compile_context>

<pallas_src>
import jax
import jax.numpy as jnp
from jax.experimental import pallas as pl
from jax.experimental.pallas import tpu as pltpu  # noqa: F401  (TPU tuning hooks)


def _make_kernel(Bp, T, N, H, Z):
    bf16 = jnp.bfloat16

    def kernel(seq_ref, w_in_ref, w_s_ref, out_ref):
        # ---- one-time loads + static slices of the packed weight slabs ----
        w_in = w_in_ref[...]                            # (rows_in, 4H) f32
        w_s = w_s_ref[...]                              # (rows_s, 4H) f32
        wx = w_in[:N, :3 * H].astype(bf16)              # (N, 3H) x-side gates
        wb = w_in[:N, 3 * H:4 * H].astype(bf16)         # (N, H)  belta_fc
        bx = w_in[N:N + 1, :3 * H]                      # (1, 3H)
        bb = w_in[N:N + 1, 3 * H:4 * H]                 # (1, H)
        w_ur = w_s[:H, :2 * H].astype(bf16)             # (H, 2H) [ws1|ws2]
        w_c = w_s[:H, 2 * H:3 * H].astype(bf16)         # (H, H)  ws3
        w_o = w_s[:H, 3 * H:3 * H + Z].astype(bf16)     # (H, Z)  out_fc
        b_o = w_s[H:H + 1, 3 * H:3 * H + Z]             # (1, Z)

        # ---- hoisted input-side work: two MXU dots, no concat, no post-dot
        #      lane slicing; belta computed once for all T ----
        xa = seq_ref[0] + seq_ref[1]                    # (T*Bp, N) f32 VPU add
        td = seq_ref[2]
        x_proj = jnp.dot(xa.astype(bf16), wx,
                         preferred_element_type=jnp.float32) + bx     # (T*Bp, 3H)
        belta = jnp.exp(-jnp.maximum(
            jnp.dot(td.astype(bf16), wb,
                    preferred_element_type=jnp.float32) + bb, 0.0))   # (T*Bp, H)

        # ---- serial GRUI recurrence, fully unrolled (T static) ----
        state = None
        for t in range(T):
            lo = t * Bp                                 # multiple of 8: aligned rows
            xp = x_proj[lo:lo + Bp, :]                  # (Bp, 3H)
            xp_ur = xp[:, :2 * H]                       # (Bp, 2H)
            xp_c = xp[:, 2 * H:]                        # (Bp, H)
            if t == 0:
                # state == 0: skip both matmuls and the belta*state multiply.
                u = jax.nn.sigmoid(xp[:, :H])
                c = jnp.tanh(xp_c)
                state = u * c
            else:
                s = belta[lo:lo + Bp, :] * state        # (Bp, H)
                ur = jnp.dot(s.astype(bf16), w_ur,
                             preferred_element_type=jnp.float32) + xp_ur
                g = jax.nn.sigmoid(ur)                  # one EUP dispatch for u and r
                u, r = g[:, :H], g[:, H:]
                c = jnp.tanh(jnp.dot((r * s).astype(bf16), w_c,
                                     preferred_element_type=jnp.float32) + xp_c)
                state = s + u * (c - s)                 # == (1-u)*s + u*c

        out_ref[...] = (jnp.dot(state.astype(bf16), w_o,
                                preferred_element_type=jnp.float32)
                        + b_o).astype(out_ref.dtype)

    return kernel


def generator_seq2z_forward(params, x, noise, time_delta):
    """x, noise, time_delta: (B, T, N) float32 -> (B, Z) float32."""
    B, T, N = x.shape
    H = params["h_dim"]
    Z = params["z_dim"]
    Bp = -(-B // 8) * 8                                 # sublane-aligned batch
    TB = T * Bp

    # One coalesced sequence slab: time-major, batch padded to Bp, flattened so
    # each unrolled step reads an aligned, contiguous (Bp, N) row block.
    seq = jnp.stack([x, noise, time_delta], axis=0)     # (3, B, T, N)
    seq = jnp.transpose(seq, (0, 2, 1, 3))              # (3, T, B, N) - one HLO
    seq = jnp.pad(seq, ((0, 0), (0, 0), (0, Bp - B), (0, 0)))
    seq = seq.reshape(3, TB, N)

    flops = (2 * TB * N * 3 * H + 2 * TB * N * H
             + (T - 1) * (2 * Bp * H * 2 * H + 2 * Bp * H * H)
             + 2 * Bp * H * Z)
    transcendentals = TB * H + T * Bp * 3 * H
    bytes_accessed = 4 * (seq.size + params["w_in_slab"].size
                          + params["w_state_slab"].size + Bp * Z)

    out = pl.pallas_call(
        _make_kernel(Bp, T, N, H, Z),
        out_shape=jax.ShapeDtypeStruct((Bp, Z), jnp.float32),
        cost_estimate=pl.CostEstimate(flops=flops,
                                      transcendentals=transcendentals,
                                      bytes_accessed=bytes_accessed),
    )(seq, params["w_in_slab"], params["w_state_slab"])
    return out[:B]


# ----------------------------------------------------------------------------
# Parameter construction (PyTorch nn.Linear-style init) and kernel-side packing
# ----------------------------------------------------------------------------
def init_params(key, input_size, h_dim, z_dim):
    """Deterministic PyTorch-Linear-style init in raw (out, in) layout."""
    ks = jax.random.split(key, 5)

    def linear(k, out_f, in_f):
        kw, kb = jax.random.split(k)
        bound = 1.0 / jnp.sqrt(jnp.float32(in_f))
        W = jax.random.uniform(kw, (out_f, in_f), jnp.float32, -bound, bound)
        b = jax.random.uniform(kb, (out_f,), jnp.float32, -bound, bound)
        return W, b

    Wb, bb = linear(ks[0], h_dim, input_size)            # belta_fc
    W1, b1 = linear(ks[1], h_dim, input_size + h_dim)    # fc1 (update gate)
    W2, b2 = linear(ks[2], h_dim, input_size + h_dim)    # fc2 (reset gate)
    W3, b3 = linear(ks[3], h_dim, input_size + h_dim)    # fc3 (candidate)
    Wo, bo = linear(ks[4], z_dim, h_dim)                 # out_fc
    return dict(Wb=Wb, bb=bb, W1=W1, b1=b1, W2=W2, b2=b2,
                W3=W3, b3=b3, Wo=Wo, bo=bo)


def pack_params(raw, input_size, h_dim, z_dim):
    """Pack raw PyTorch-layout weights into the two fused kernel slabs."""
    N, H, Z = input_size, h_dim, z_dim
    assert 3 * H + Z <= 4 * H, "z_dim must be <= h_dim for the packed state slab"

    # fc weights act on cat([state, x]); split into state / x parts, (in, out).
    wx = [raw[k][:, H:].T for k in ("W1", "W2", "W3")]   # (N, H) each
    ws = [raw[k][:, :H].T for k in ("W1", "W2", "W3")]   # (H, H) each

    rows_in = -(-(N + 1) // 8) * 8
    w_in_slab = jnp.zeros((rows_in, 4 * H), jnp.float32)
    w_in_slab = w_in_slab.at[:N, :].set(
        jnp.concatenate(wx + [raw["Wb"].T], axis=1))
    w_in_slab = w_in_slab.at[N, :].set(
        jnp.concatenate([raw["b1"], raw["b2"], raw["b3"], raw["bb"]]))

    rows_s = -(-(H + 1) // 8) * 8
    w_state_slab = jnp.zeros((rows_s, 4 * H), jnp.float32)
    w_state_slab = w_state_slab.at[:H, :2 * H].set(jnp.concatenate(ws[:2], axis=1))
    w_state_slab = w_state_slab.at[:H, 2 * H:3 * H].set(ws[2])
    w_state_slab = w_state_slab.at[:H, 3 * H:3 * H + Z].set(raw["Wo"].T)
    w_state_slab = w_state_slab.at[H, 3 * H:3 * H + Z].set(raw["bo"])

    return dict(w_in_slab=w_in_slab, w_state_slab=w_state_slab, h_dim=H, z_dim=Z)


def reference_forward(raw, x, noise, time_delta):
    """Pure-JAX reference with the exact PyTorch-module structure.  Matmul
    operands are cast to bf16 (f32 accumulate) to match the MXU contraction
    used by the kernel; all other math stays f32."""
    B, T, N = x.shape
    H = raw["Wb"].shape[0]

    def mm(a, W):   # a @ W.T, bf16 operands, f32 accumulate
        return jnp.dot(a.astype(jnp.bfloat16), W.T.astype(jnp.bfloat16),
                       preferred_element_type=jnp.float32)

    xa = x + noise
    belta = mm(time_delta, raw["Wb"]) + raw["bb"]
    belta = jnp.exp(-jnp.maximum(jnp.zeros_like(belta), belta))
    state = jnp.zeros((B, H), jnp.float32)
    for i in range(T):
        s = belta[:, i] * state
        cat_sx = jnp.concatenate([s, xa[:, i]], axis=-1)
        u = jax.nn.sigmoid(mm(cat_sx, raw["W1"]) + raw["b1"])
        r = jax.nn.sigmoid(mm(cat_sx, raw["W2"]) + raw["b2"])
        cat_rx = jnp.concatenate([r * s, xa[:, i]], axis=-1)
        c = jnp.tanh(mm(cat_rx, raw["W3"]) + raw["b3"])
        state = (1.0 - u) * s + u * c
    return mm(state, raw["Wo"]) + raw["bo"]


if __name__ == "__main__":
    B, T = 4, 6          # batch, sample_len
    N = 16               # input_size (N*F)
    H = 32               # h_dim
    Z = 8                # z_dim

    key = jax.random.PRNGKey(0)
    kp, kx, kn, kt = jax.random.split(key, 4)

    raw = init_params(kp, N, H, Z)
    params = pack_params(raw, N, H, Z)

    x = jax.random.normal(kx, (B, T, N), jnp.float32)
    noise = jax.random.normal(kn, (B, T, N), jnp.float32)
    time_delta = jax.random.uniform(kt, (B, T, N), jnp.float32, 0.0, 2.0)

    out = generator_seq2z_forward(params, x, noise, time_delta)
    out = jax.block_until_ready(out)

    ref = reference_forward(raw, x, noise, time_delta)
    assert out.shape == (B, Z)
    # Kernel and reference use the same bf16-operand / f32-accumulate MXU
    # contraction; tolerance covers accumulation-order + transcendental-impl
    # differences only.
    assert jnp.allclose(out, ref, atol=1e-3, rtol=1e-3), "mismatch vs reference"

    print("KERNEL_OK")
</pallas_src>

<mosaic_0001>
module attributes {stable_mosaic.version = 11 : i64} {
  func.func @kernel(%arg0: memref<3x48x16xf32, #tpu.memory_space<vmem>>, %arg1: memref<24x128xf32, #tpu.memory_space<vmem>>, %arg2: memref<40x128xf32, #tpu.memory_space<vmem>>, %arg3: memref<8x8xf32, #tpu.memory_space<vmem>>) attributes {dimension_semantics = [], scalar_prefetch = 0 : i64, scratch_operands = 0 : i64, tpu.core_type = #tpu.core_type<tc>} {
    %c0 = arith.constant 0 : index
    %c0_0 = arith.constant 0 : index
    %0 = vector.load %arg1[%c0, %c0_0] : memref<24x128xf32, #tpu.memory_space<vmem>>, vector<24x128xf32>
    %c0_1 = arith.constant 0 : index
    %c0_2 = arith.constant 0 : index
    %1 = vector.load %arg2[%c0_1, %c0_2] : memref<40x128xf32, #tpu.memory_space<vmem>>, vector<40x128xf32>
    %2 = vector.extract_strided_slice %0 {offsets = [0, 0], sizes = [16, 96], strides = [1, 1]} : vector<24x128xf32> to vector<16x96xf32>
    %3 = arith.truncf %2 : vector<16x96xf32> to vector<16x96xbf16>
    %4 = vector.extract_strided_slice %0 {offsets = [0, 96], sizes = [16, 32], strides = [1, 1]} : vector<24x128xf32> to vector<16x32xf32>
    %5 = arith.truncf %4 : vector<16x32xf32> to vector<16x32xbf16>
    %6 = vector.extract_strided_slice %0 {offsets = [16, 0], sizes = [1, 96], strides = [1, 1]} : vector<24x128xf32> to vector<1x96xf32>
    %7 = vector.extract_strided_slice %0 {offsets = [16, 96], sizes = [1, 32], strides = [1, 1]} : vector<24x128xf32> to vector<1x32xf32>
    %8 = vector.extract_strided_slice %1 {offsets = [0, 0], sizes = [32, 64], strides = [1, 1]} : vector<40x128xf32> to vector<32x64xf32>
    %9 = arith.truncf %8 : vector<32x64xf32> to vector<32x64xbf16>
    %10 = vector.extract_strided_slice %1 {offsets = [0, 64], sizes = [32, 32], strides = [1, 1]} : vector<40x128xf32> to vector<32x32xf32>
    %11 = arith.truncf %10 : vector<32x32xf32> to vector<32x32xbf16>
    %12 = vector.extract_strided_slice %1 {offsets = [0, 96], sizes = [32, 8], strides = [1, 1]} : vector<40x128xf32> to vector<32x8xf32>
    %13 = arith.truncf %12 : vector<32x8xf32> to vector<32x8xbf16>
    %14 = vector.extract_strided_slice %1 {offsets = [32, 96], sizes = [1, 8], strides = [1, 1]} : vector<40x128xf32> to vector<1x8xf32>
    %c0_3 = arith.constant 0 : index
    %c0_4 = arith.constant 0 : index
    %c0_5 = arith.constant 0 : index
    %15 = vector.load %arg0[%c0_3, %c0_4, %c0_5] : memref<3x48x16xf32, #tpu.memory_space<vmem>>, vector<1x48x16xf32>
    %16 = vector.shape_cast %15 : vector<1x48x16xf32> to vector<48x16xf32>
    %c1 = arith.constant 1 : index
    %c0_6 = arith.constant 0 : index
    %c0_7 = arith.constant 0 : index
    %17 = vector.load %arg0[%c1, %c0_6, %c0_7] : memref<3x48x16xf32, #tpu.memory_space<vmem>>, vector<1x48x16xf32>
    %18 = vector.shape_cast %17 : vector<1x48x16xf32> to vector<48x16xf32>
    %19 = arith.addf %16, %18 : vector<48x16xf32>
    %c2 = arith.constant 2 : index
    %c0_8 = arith.constant 0 : index
    %c0_9 = arith.constant 0 : index
    %20 = vector.load %arg0[%c2, %c0_8, %c0_9] : memref<3x48x16xf32, #tpu.memory_space<vmem>>, vector<1x48x16xf32>
    %21 = vector.shape_cast %20 : vector<1x48x16xf32> to vector<48x16xf32>
    %22 = arith.truncf %19 : vector<48x16xf32> to vector<48x16xbf16>
    %cst = arith.constant dense<0.000000e+00> : vector<48x96xf32>
    %23 = tpu.matmul %22, %3, %cst {dimension_numbers = #tpu.dot_dimension_numbers<[1], [0], [0], [1], [0, 0, 1, 1], [], []>} : vector<48x16xbf16>, vector<16x96xbf16>, vector<48x96xf32> -> vector<48x96xf32>
    %24 = vector.broadcast %6 : vector<1x96xf32> to vector<48x96xf32>
    %25 = arith.addf %23, %24 : vector<48x96xf32>
    %26 = arith.truncf %21 : vector<48x16xf32> to vector<48x16xbf16>
    %cst_10 = arith.constant dense<0.000000e+00> : vector<48x32xf32>
    %27 = tpu.matmul %26, %5, %cst_10 {dimension_numbers = #tpu.dot_dimension_numbers<[1], [0], [0], [1], [0, 0, 1, 1], [], []>} : vector<48x16xbf16>, vector<16x32xbf16>, vector<48x32xf32> -> vector<48x32xf32>
    %28 = vector.broadcast %7 : vector<1x32xf32> to vector<48x32xf32>
    %29 = arith.addf %27, %28 : vector<48x32xf32>
    %cst_11 = arith.constant 0.000000e+00 : f32
    %30 = vector.broadcast %cst_11 : f32 to vector<48x32xf32>
    %31 = arith.maximumf %29, %30 : vector<48x32xf32>
    %cst_12 = arith.constant 0.000000e+00 : f32
    %32 = vector.broadcast %cst_12 : f32 to vector<48x32xf32>
    %33 = arith.subf %32, %31 : vector<48x32xf32>
    %34 = math.exp %33 : vector<48x32xf32>
    %35 = vector.extract_strided_slice %25 {offsets = [0, 0], sizes = [8, 96], strides = [1, 1]} : vector<48x96xf32> to vector<8x96xf32>
    %36 = vector.extract_strided_slice %35 {offsets = [0, 64], sizes = [8, 32], strides = [1, 1]} : vector<8x96xf32> to vector<8x32xf32>
    %37 = vector.extract_strided_slice %35 {offsets = [0, 0], sizes = [8, 32], strides = [1, 1]} : vector<8x96xf32> to vector<8x32xf32>
    %38 = arith.negf %37 : vector<8x32xf32>
    %39 = math.exp %38 : vector<8x32xf32>
    %cst_13 = arith.constant 1.000000e+00 : f32
    %40 = vector.broadcast %cst_13 : f32 to vector<8x32xf32>
    %41 = arith.addf %40, %39 : vector<8x32xf32>
    %42 = arith.divf %40, %41 : vector<8x32xf32>
    %43 = math.tanh %36 : vector<8x32xf32>
    %44 = arith.mulf %42, %43 : vector<8x32xf32>
    %45 = vector.extract_strided_slice %25 {offsets = [8, 0], sizes = [8, 96], strides = [1, 1]} : vector<48x96xf32> to vector<8x96xf32>
    %46 = vector.extract_strided_slice %45 {offsets = [0, 0], sizes = [8, 64], strides = [1, 1]} : vector<8x96xf32> to vector<8x64xf32>
    %47 = vector.extract_strided_slice %45 {offsets = [0, 64], sizes = [8, 32], strides = [1, 1]} : vector<8x96xf32> to vector<8x32xf32>
    %48 = vector.extract_strided_slice %34 {offsets = [8, 0], sizes = [8, 32], strides = [1, 1]} : vector<48x32xf32> to vector<8x32xf32>
    %49 = arith.mulf %48, %44 : vector<8x32xf32>
    %50 = arith.truncf %49 : vector<8x32xf32> to vector<8x32xbf16>
    %cst_14 = arith.constant dense<0.000000e+00> : vector<8x64xf32>
    %51 = tpu.matmul %50, %9, %cst_14 {dimension_numbers = #tpu.dot_dimension_numbers<[1], [0], [0], [1], [0, 0, 1, 1], [], []>} : vector<8x32xbf16>, vector<32x64xbf16>, vector<8x64xf32> -> vector<8x64xf32>
    %52 = arith.addf %51, %46 : vector<8x64xf32>
    %53 = arith.negf %52 : vector<8x64xf32>
    %54 = math.exp %53 : vector<8x64xf32>
    %cst_15 = arith.constant 1.000000e+00 : f32
    %55 = vector.broadcast %cst_15 : f32 to vector<8x64xf32>
    %56 = arith.addf %55, %54 : vector<8x64xf32>
    %57 = arith.divf %55, %56 : vector<8x64xf32>
    %58 = vector.extract_strided_slice %57 {offsets = [0, 0], sizes = [8, 32], strides = [1, 1]} : vector<8x64xf32> to vector<8x32xf32>
    %59 = vector.extract_strided_slice %57 {offsets = [0, 32], sizes = [8, 32], strides = [1, 1]} : vector<8x64xf32> to vector<8x32xf32>
    %60 = arith.mulf %59, %49 : vector<8x32xf32>
    %61 = arith.truncf %60 : vector<8x32xf32> to vector<8x32xbf16>
    %cst_16 = arith.constant dense<0.000000e+00> : vector<8x32xf32>
    %62 = tpu.matmul %61, %11, %cst_16 {dimension_numbers = #tpu.dot_dimension_numbers<[1], [0], [0], [1], [0, 0, 1, 1], [], []>} : vector<8x32xbf16>, vector<32x32xbf16>, vector<8x32xf32> -> vector<8x32xf32>
    %63 = arith.addf %62, %47 : vector<8x32xf32>
    %64 = math.tanh %63 : vector<8x32xf32>
    %65 = arith.subf %64, %49 : vector<8x32xf32>
    %66 = arith.mulf %58, %65 : vector<8x32xf32>
    %67 = arith.addf %49, %66 : vector<8x32xf32>
    %68 = vector.extract_strided_slice %25 {offsets = [16, 0], sizes = [8, 96], strides = [1, 1]} : vector<48x96xf32> to vector<8x96xf32>
    %69 = vector.extract_strided_slice %68 {offsets = [0, 0], sizes = [8, 64], strides = [1, 1]} : vector<8x96xf32> to vector<8x64xf32>
    %70 = vector.extract_strided_slice %68 {offsets = [0, 64], sizes = [8, 32], strides = [1, 1]} : vector<8x96xf32> to vector<8x32xf32>
    %71 = vector.extract_strided_slice %34 {offsets = [16, 0], sizes = [8, 32], strides = [1, 1]} : vector<48x32xf32> to vector<8x32xf32>
    %72 = arith.mulf %71, %67 : vector<8x32xf32>
    %73 = arith.truncf %72 : vector<8x32xf32> to vector<8x32xbf16>
    %cst_17 = arith.constant dense<0.000000e+00> : vector<8x64xf32>
    %74 = tpu.matmul %73, %9, %cst_17 {dimension_numbers = #tpu.dot_dimension_numbers<[1], [0], [0], [1], [0, 0, 1, 1], [], []>} : vector<8x32xbf16>, vector<32x64xbf16>, vector<8x64xf32> -> vector<8x64xf32>
    %75 = arith.addf %74, %69 : vector<8x64xf32>
    %76 = arith.negf %75 : vector<8x64xf32>
    %77 = math.exp %76 : vector<8x64xf32>
    %cst_18 = arith.constant 1.000000e+00 : f32
    %78 = vector.broadcast %cst_18 : f32 to vector<8x64xf32>
    %79 = arith.addf %78, %77 : vector<8x64xf32>
    %80 = arith.divf %78, %79 : vector<8x64xf32>
    %81 = vector.extract_strided_slice %80 {offsets = [0, 0], sizes = [8, 32], strides = [1, 1]} : vector<8x64xf32> to vector<8x32xf32>
    %82 = vector.extract_strided_slice %80 {offsets = [0, 32], sizes = [8, 32], strides = [1, 1]} : vector<8x64xf32> to vector<8x32xf32>
    %83 = arith.mulf %82, %72 : vector<8x32xf32>
    %84 = arith.truncf %83 : vector<8x32xf32> to vector<8x32xbf16>
    %cst_19 = arith.constant dense<0.000000e+00> : vector<8x32xf32>
    %85 = tpu.matmul %84, %11, %cst_19 {dimension_numbers = #tpu.dot_dimension_numbers<[1], [0], [0], [1], [0, 0, 1, 1], [], []>} : vector<8x32xbf16>, vector<32x32xbf16>, vector<8x32xf32> -> vector<8x32xf32>
    %86 = arith.addf %85, %70 : vector<8x32xf32>
    %87 = math.tanh %86 : vector<8x32xf32>
    %88 = arith.subf %87, %72 : vector<8x32xf32>
    %89 = arith.mulf %81, %88 : vector<8x32xf32>
    %90 = arith.addf %72, %89 : vector<8x32xf32>
    %91 = vector.extract_strided_slice %25 {offsets = [24, 0], sizes = [8, 96], strides = [1, 1]} : vector<48x96xf32> to vector<8x96xf32>
    %92 = vector.extract_strided_slice %91 {offsets = [0, 0], sizes = [8, 64], strides = [1, 1]} : vector<8x96xf32> to vector<8x64xf32>
    %93 = vector.extract_strided_slice %91 {offsets = [0, 64], sizes = [8, 32], strides = [1, 1]} : vector<8x96xf32> to vector<8x32xf32>
    %94 = vector.extract_strided_slice %34 {offsets = [24, 0], sizes = [8, 32], strides = [1, 1]} : vector<48x32xf32> to vector<8x32xf32>
    %95 = arith.mulf %94, %90 : vector<8x32xf32>
    %96 = arith.truncf %95 : vector<8x32xf32> to vector<8x32xbf16>
    %cst_20 = arith.constant dense<0.000000e+00> : vector<8x64xf32>
    %97 = tpu.matmul %96, %9, %cst_20 {dimension_numbers = #tpu.dot_dimension_numbers<[1], [0], [0], [1], [0, 0, 1, 1], [], []>} : vector<8x32xbf16>, vector<32x64xbf16>, vector<8x64xf32> -> vector<8x64xf32>
    %98 = arith.addf %97, %92 : vector<8x64xf32>
    %99 = arith.negf %98 : vector<8x64xf32>
    %100 = math.exp %99 : vector<8x64xf32>
    %cst_21 = arith.constant 1.000000e+00 : f32
    %101 = vector.broadcast %cst_21 : f32 to vector<8x64xf32>
    %102 = arith.addf %101, %100 : vector<8x64xf32>
    %103 = arith.divf %101, %102 : vector<8x64xf32>
    %104 = vector.extract_strided_slice %103 {offsets = [0, 0], sizes = [8, 32], strides = [1, 1]} : vector<8x64xf32> to vector<8x32xf32>
    %105 = vector.extract_strided_slice %103 {offsets = [0, 32], sizes = [8, 32], strides = [1, 1]} : vector<8x64xf32> to vector<8x32xf32>
    %106 = arith.mulf %105, %95 : vector<8x32xf32>
    %107 = arith.truncf %106 : vector<8x32xf32> to vector<8x32xbf16>
    %cst_22 = arith.constant dense<0.000000e+00> : vector<8x32xf32>
    %108 = tpu.matmul %107, %11, %cst_22 {dimension_numbers = #tpu.dot_dimension_numbers<[1], [0], [0], [1], [0, 0, 1, 1], [], []>} : vector<8x32xbf16>, vector<32x32xbf16>, vector<8x32xf32> -> vector<8x32xf32>
    %109 = arith.addf %108, %93 : vector<8x32xf32>
    %110 = math.tanh %109 : vector<8x32xf32>
    %111 = arith.subf %110, %95 : vector<8x32xf32>
    %112 = arith.mulf %104, %111 : vector<8x32xf32>
    %113 = arith.addf %95, %112 : vector<8x32xf32>
    %114 = vector.extract_strided_slice %25 {offsets = [32, 0], sizes = [8, 96], strides = [1, 1]} : vector<48x96xf32> to vector<8x96xf32>
    %115 = vector.extract_strided_slice %114 {offsets = [0, 0], sizes = [8, 64], strides = [1, 1]} : vector<8x96xf32> to vector<8x64xf32>
    %116 = vector.extract_strided_slice %114 {offsets = [0, 64], sizes = [8, 32], strides = [1, 1]} : vector<8x96xf32> to vector<8x32xf32>
    %117 = vector.extract_strided_slice %34 {offsets = [32, 0], sizes = [8, 32], strides = [1, 1]} : vector<48x32xf32> to vector<8x32xf32>
    %118 = arith.mulf %117, %113 : vector<8x32xf32>
    %119 = arith.truncf %118 : vector<8x32xf32> to vector<8x32xbf16>
    %cst_23 = arith.constant dense<0.000000e+00> : vector<8x64xf32>
    %120 = tpu.matmul %119, %9, %cst_23 {dimension_numbers = #tpu.dot_dimension_numbers<[1], [0], [0], [1], [0, 0, 1, 1], [], []>} : vector<8x32xbf16>, vector<32x64xbf16>, vector<8x64xf32> -> vector<8x64xf32>
    %121 = arith.addf %120, %115 : vector<8x64xf32>
    %122 = arith.negf %121 : vector<8x64xf32>
    %123 = math.exp %122 : vector<8x64xf32>
    %cst_24 = arith.constant 1.000000e+00 : f32
    %124 = vector.broadcast %cst_24 : f32 to vector<8x64xf32>
    %125 = arith.addf %124, %123 : vector<8x64xf32>
    %126 = arith.divf %124, %125 : vector<8x64xf32>
    %127 = vector.extract_strided_slice %126 {offsets = [0, 0], sizes = [8, 32], strides = [1, 1]} : vector<8x64xf32> to vector<8x32xf32>
    %128 = vector.extract_strided_slice %126 {offsets = [0, 32], sizes = [8, 32], strides = [1, 1]} : vector<8x64xf32> to vector<8x32xf32>
    %129 = arith.mulf %128, %118 : vector<8x32xf32>
    %130 = arith.truncf %129 : vector<8x32xf32> to vector<8x32xbf16>
    %cst_25 = arith.constant dense<0.000000e+00> : vector<8x32xf32>
    %131 = tpu.matmul %130, %11, %cst_25 {dimension_numbers = #tpu.dot_dimension_numbers<[1], [0], [0], [1], [0, 0, 1, 1], [], []>} : vector<8x32xbf16>, vector<32x32xbf16>, vector<8x32xf32> -> vector<8x32xf32>
    %132 = arith.addf %131, %116 : vector<8x32xf32>
    %133 = math.tanh %132 : vector<8x32xf32>
    %134 = arith.subf %133, %118 : vector<8x32xf32>
    %135 = arith.mulf %127, %134 : vector<8x32xf32>
    %136 = arith.addf %118, %135 : vector<8x32xf32>
    %137 = vector.extract_strided_slice %25 {offsets = [40, 0], sizes = [8, 96], strides = [1, 1]} : vector<48x96xf32> to vector<8x96xf32>
    %138 = vector.extract_strided_slice %137 {offsets = [0, 0], sizes = [8, 64], strides = [1, 1]} : vector<8x96xf32> to vector<8x64xf32>
    %139 = vector.extract_strided_slice %137 {offsets = [0, 64], sizes = [8, 32], strides = [1, 1]} : vector<8x96xf32> to vector<8x32xf32>
    %140 = vector.extract_strided_slice %34 {offsets = [40, 0], sizes = [8, 32], strides = [1, 1]} : vector<48x32xf32> to vector<8x32xf32>
    %141 = arith.mulf %140, %136 : vector<8x32xf32>
    %142 = arith.truncf %141 : vector<8x32xf32> to vector<8x32xbf16>
    %cst_26 = arith.constant dense<0.000000e+00> : vector<8x64xf32>
    %143 = tpu.matmul %142, %9, %cst_26 {dimension_numbers = #tpu.dot_dimension_numbers<[1], [0], [0], [1], [0, 0, 1, 1], [], []>} : vector<8x32xbf16>, vector<32x64xbf16>, vector<8x64xf32> -> vector<8x64xf32>
    %144 = arith.addf %143, %138 : vector<8x64xf32>
    %145 = arith.negf %144 : vector<8x64xf32>
    %146 = math.exp %145 : vector<8x64xf32>
    %cst_27 = arith.constant 1.000000e+00 : f32
    %147 = vector.broadcast %cst_27 : f32 to vector<8x64xf32>
    %148 = arith.addf %147, %146 : vector<8x64xf32>
    %149 = arith.divf %147, %148 : vector<8x64xf32>
    %150 = vector.extract_strided_slice %149 {offsets = [0, 0], sizes = [8, 32], strides = [1, 1]} : vector<8x64xf32> to vector<8x32xf32>
    %151 = vector.extract_strided_slice %149 {offsets = [0, 32], sizes = [8, 32], strides = [1, 1]} : vector<8x64xf32> to vector<8x32xf32>
    %152 = arith.mulf %151, %141 : vector<8x32xf32>
    %153 = arith.truncf %152 : vector<8x32xf32> to vector<8x32xbf16>
    %cst_28 = arith.constant dense<0.000000e+00> : vector<8x32xf32>
    %154 = tpu.matmul %153, %11, %cst_28 {dimension_numbers = #tpu.dot_dimension_numbers<[1], [0], [0], [1], [0, 0, 1, 1], [], []>} : vector<8x32xbf16>, vector<32x32xbf16>, vector<8x32xf32> -> vector<8x32xf32>
    %155 = arith.addf %154, %139 : vector<8x32xf32>
    %156 = math.tanh %155 : vector<8x32xf32>
    %157 = arith.subf %156, %141 : vector<8x32xf32>
    %158 = arith.mulf %150, %157 : vector<8x32xf32>
    %159 = arith.addf %141, %158 : vector<8x32xf32>
    %160 = arith.truncf %159 : vector<8x32xf32> to vector<8x32xbf16>
    %cst_29 = arith.constant dense<0.000000e+00> : vector<8x8xf32>
    %161 = tpu.matmul %160, %13, %cst_29 {dimension_numbers = #tpu.dot_dimension_numbers<[1], [0], [0], [1], [0, 0, 1, 1], [], []>} : vector<8x32xbf16>, vector<32x8xbf16>, vector<8x8xf32> -> vector<8x8xf32>
    %162 = vector.broadcast %14 : vector<1x8xf32> to vector<8x8xf32>
    %163 = arith.addf %161, %162 : vector<8x8xf32>
    %c0_30 = arith.constant 0 : index
    %c0_31 = arith.constant 0 : index
    %164 = vector.load %arg3[%c0_30, %c0_31] : memref<8x8xf32, #tpu.memory_space<vmem>>, vector<8x8xf32>
    tpu.vector_store %arg3[%c0_30, %c0_31], %163 {strides = array<i32>} : memref<8x8xf32, #tpu.memory_space<vmem>>, vector<8x8xf32>,
    return
  }
}

</mosaic_0001>

<bundles_post_ra>
// kernel: tpu_custom_call.1
= control target key start
LH: loop header
LB: loop body
LE: loop exit
PB: predicated region body
PF: predicated region fallthrough
CT: control target
= control target key end

     0   :  { %v1139_v3 = vmov 0.0   ;;  %vm1140_vm0 = vmmov 0   ;;  %s1141_s24 = smov 32   ;;  %vm60_vm1 = vcmask 130048   ;;  %s1427_s0 = inlined_call_operand.vmem [shape: f32[3,48,16], index: 0, kind: input, shape index: {}]   ;;  %s1428_s1 = inlined_call_operand.vmem [shape: f32[24,128], index: 1, kind: input, shape index: {}]   ;;  %s1429_s2 = inlined_call_operand.vmem [shape: f32[40,128], index: 2, kind: input, shape index: {}]   ;;  %s1430_s3 = inlined_call_operand.hbm [shape: f32[8,8], index: 3, kind: output, shape index: {}]  }
   0x1   :  { %v16_v0 = vld [vmem:[%s1428_s1] sm:$0xff]  ;;  %v17_v1 = vld [vmem:[%s1428_s1 + $0x8] sm:$0xff]  ;;  %949 = vmatprep.subr.bf16.mxu0 %v1139_v3  ;;  %951 = vmatprep.mubr.msk.bf16.mxu0 %vm1140_vm0, %v1139_v3  ;;  %v873_v6 = vld [vmem:[%s1427_s0 + $0x30] sm:$0xff] }
   0x2   :  { %v27_v2 = vld [vmem:[%s1427_s0] sm:$0xff]  ;;  %v24_v4 = vpack.c.bf16 %v17_v1, %v16_v0  ;;  %v28_v5 = vld [vmem:[%s1427_s0 + $0x8] sm:$0xff]  ;;  %v874_v7 = vld [vmem:[%s1427_s0 + $0x38] sm:$0xff]  ;;  %963 = vmatprep.subr.bf16.mxu1 %v1139_v3  ;;  %965 = vmatprep.mubr.msk.bf16.mxu1 %vm1140_vm0, %v1139_v3 }
   0x3   :  { %v40_v8 = vadd.f32 %v873_v6, %v27_v2  ;;  %v41_v9 = vadd.f32 %v874_v7, %v28_v5 }
   0x4   :  { %131 = vrot.lane.b32.xlu0 %v24_v4, %s1141_s24  ;;  %950 = vmatpush3.bf16.msra.mxu0 %v24_v4 }
   0x5   :  { %v53_v10 = vpack.c.bf16 %v41_v9, %v40_v8  ;;  %977 = vmatprep.subr.bf16.mxu0 %v1139_v3 }
   0x6   :  { %8 = vsyncpa [#allocation3], 0  ;;  %v56_v11 = vlaneseq  ;;  %v18_v13 = vld [vmem:[%s1428_s1 + $0x10] sm:$0xff]  ;;  %v879_v16 = vld [vmem:[%s1427_s0 + $0x60] sm:$0xff]  ;;  %s1142_s4 = smov 64   ;;  %vm237_vm2 = vcmask 261120  }
   0x7   :  { %952 = vmatmul.mubr.msk.bf16.vlgmr.msra.gmra.mxu0 %vm60_vm1, %v53_v10  ;;  %v880_v17 = vld [vmem:[%s1427_s0 + $0x68] sm:$0xff]  ;;  %v881_v20 = vld [vmem:[%s1427_s0 + $0x70] sm:$0xff]  ;;  %v882_v21 = vld [vmem:[%s1427_s0 + $0x78] sm:$0xff]  ;;  %s1143_s8 = smov 96   ;;  %vm857_vm3 = vcmask 64512  }
   0x8   :  { %955 = vmatprep.mubr.msk.bf16.mxu0 %vm1140_vm0, %v1139_v3  ;;  %v1194_v12 = vshrl.u32 %v56_v11, 7  ;;  %v127_v19 = vpack.c.bf16 %v880_v17, %v879_v16  ;;  %v128_v22 = vpack.c.bf16 %v882_v21, %v881_v20  ;;  %v883_v23 = vld [vmem:[%s1427_s0 + $0x80] sm:$0xff]  ;;  %v884_v24 = vld [vmem:[%s1427_s0 + $0x88] sm:$0xff]  ;;  %v29_v26 = vld [vmem:[%s1427_s0 + $0x10] sm:$0xff] }
   0x9   :  { %v129_v25 = vpack.c.bf16 %v884_v24, %v883_v23  ;;  %v30_v27 = vld [vmem:[%s1427_s0 + $0x18] sm:$0xff]  ;;  %v875_v28 = vld [vmem:[%s1427_s0 + $0x40] sm:$0xff]  ;;  %v876_v29 = vld [vmem:[%s1427_s0 + $0x48] sm:$0xff] }
   0xa   :  { %v58_v14 = vsub.s32 0, %v1194_v12  ;;  %v42_v30 = vadd.f32 %v875_v28, %v29_v26  ;;  %v43_v31 = vadd.f32 %v876_v29, %v30_v27  ;;  %v31_v33 = vld [vmem:[%s1427_s0 + $0x20] sm:$0xff]  ;;  %v32_v34 = vld [vmem:[%s1427_s0 + $0x28] sm:$0xff]  ;;  %v877_v35 = vld [vmem:[%s1427_s0 + $0x50] sm:$0xff] }
   0xb   :  { %v21_v37 = vld [vmem:[%s1429_s2 + $0x10] sm:$0xff]  ;;  %v22_v38 = vld [vmem:[%s1429_s2 + $0x18] sm:$0xff]  ;;  %v44_v40 = vadd.f32 %v877_v35, %v31_v33  ;;  %v19_v48 = vld [vmem:[%s1429_s2] sm:$0xff] }
   0xc   :  { %v1202_v15 = vrot.slane %v18_v13, %v58_v14  ;;  %v54_v32 = vpack.c.bf16 %v43_v31, %v42_v30  ;;  %v878_v39 = vld [vmem:[%s1427_s0 + $0x58] sm:$0xff]  ;;  %v1268_v42 = vpack.c.bf16 %v22_v38, %v21_v37  ;;  %v20_v49 = vld [vmem:[%s1429_s2 + $0x8] sm:$0xff] }
   0xd   :  { %v45_v43 = vadd.f32 %v878_v39, %v32_v34  ;;  %v1283_v50 = vpack.c.bf16 %v20_v49, %v19_v48 }
   0xe   :  { %135 = vrot.lane.b32.xlu0 %v1202_v15, %s1141_s24  ;;  %978 = vmatpush3.bf16.msra.mxu0 %v1268_v42 }
   0xf   :  { %956 = vmatmul.mubr.msk.bf16.gmra.mxu0 %vm60_vm1, %v54_v32  ;;  %v55_v45 = vpack.c.bf16 %v45_v43, %v44_v40  ;;  %979 = vmatprep.subr.bf16.mxu0 %v1139_v3 }
  0x10   :  { %959 = vmatprep.mubr.msk.bf16.mxu0 %vm1140_vm0, %v1139_v3 }
  0x12   :  { %300 = vrot.lane.b32.xlu0 %v1268_v42, %s1142_s4  ;;  %980 = vmatpush3.bf16.msra.mxu0 %v1283_v50 }
  0x13   :  { %993 = vmatprep.subr.bf16.mxu0 %v1139_v3 }
  0x17   :  { %960 = vmatmul.mubr.msk.bf16.gmra.mxu0 %vm60_vm1, %v55_v45 }
  0x18   :  { %981 = vmatprep.mubr.msk.bf16.mxu0 %vm1140_vm0, %v1139_v3 }
  0x76   :  { %v132_v18 = vpop.permute.xlu0 %131 }
  0x77   :  { %964 = vmatpush3.bf16.msra.mxu1 %v132_v18 }
  0x78   :  { %985 = vmatprep.subr.bf16.mxu1 %v1139_v3 }
  0x7a   :  { %966 = vmatmul.mubr.msk.bf16.vlgmr.msra.gmra.mxu1 %vm60_vm1, %v127_v19 }
  0x7b   :  { %969 = vmatprep.mubr.msk.bf16.mxu1 %vm1140_vm0, %v1139_v3 }
  0x80   :  { %v1288_v55 = vpop.permute.xlu0 %135 }
  0x82   :  { %970 = vmatmul.mubr.msk.bf16.gmra.mxu1 %vm60_vm1, %v128_v22 }
  0x83   :  { %973 = vmatprep.mubr.msk.bf16.mxu1 %vm1140_vm0, %v1139_v3 }
  0x84   :  { %v1322_v27 = vpop.permute.xlu0 %300 }
  0x85   :  { %986 = vmatpush3.bf16.msra.mxu1 %v1322_v27 }
  0x86   :  { %987 = vmatprep.subr.bf16.mxu1 %v1139_v3 }
  0x8a   :  { %974 = vmatmul.mubr.msk.bf16.gmra.mxu1 %vm60_vm1, %v129_v25 }
  0x8b   :  { %989 = vmatprep.mubr.msk.bf16.mxu1 %vm1140_vm0, %v1139_v3 }
  0xc7   :  { %v104_v36 = vpop.f32.mrf.mxu0 }
  0xc8   :  { %v105_v41 = vadd.f32 %v104_v36, %v1202_v15 }
  0xc9   :  { %v953_v44 = vpop.f32.mrf.mxu0 }
  0xca   :  { %1071 = vtanh.f32 %v105_v41  ;;  %v891_v52 = vmul.f32 -1.442695, %v105_v41 }
  0xcb   :  { %v107_v46 = vpop.f32.mrf.mxu0 }
  0xcc   :  { %1073 = vpow2.f32 %v891_v52  ;;  %v108_v18 = vadd.f32 %v107_v46, %v1202_v15 }
  0xcd   :  { %v954_v47 = vpop.f32.mrf.mxu0 }
  0xcf   :  { %v112_v19 = vpop.f32.mrf.mxu0 }
  0xd1   :  { %v957_v20 = vpop.f32.mrf.mxu0 }
  0xd3   :  { %v1316_v21 = vpop.f32.mrf.mxu0 }
  0xd5   :  { %v958_v22 = vpop.f32.mrf.mxu0 }
  0xd7   :  { %v1072_v51 = vpop.eup %1071  ;;  %v1318_v23 = vpop.f32.mrf.mxu0 }
  0xd8   :  { %231 = vrot.lane.b32.xlu1 %v1072_v51, %s1142_s4 }
  0xd9   :  { %v1074_v56 = vpop.eup %1073  ;;  %v961_v24 = vpop.f32.mrf.mxu0 }
  0xda   :  { %v226_v60 = vadd.f32 1.0, %v1074_v56 }
  0xdb   :  { %v1320_v25 = vpop.f32.mrf.mxu0 }
  0xdc   :  { %1075 = vrcp.f32 %v226_v60 }
  0xdd   :  { %v962_v26 = vpop.f32.mrf.mxu0 }
  0xe9   :  { %v1076_v10 = vpop.eup %1075 }
 0x13a   :  { %v181_v53 = vpop.f32.mrf.mxu1 }
 0x13c   :  { %v967_v54 = vpop.f32.mrf.mxu1 }
 0x13e   :  { %v183_v57 = vpop.f32.mrf.mxu1 }
 0x13f   :  { %v184_v58 = vadd.f32 %v183_v57, %v1288_v55 }
 0x140   :  { %v968_v59 = vpop.f32.mrf.mxu1 }
 0x141   :  { %v203_v61 = vmax.f32 %v184_v58, 0.0 }
 0x142   :  { %v1291_v62 = vpop.f32.mrf.mxu1 }
 0x143   :  { %v208_v63 = vsub.f32 0.0, %v203_v61  ;;  %v189_v43 = vadd.f32 %v1291_v62, %v1288_v55  ;;  %v113_v62 = vadd.f32 %v112_v19, %v1202_v15 }
 0x144   :  { %v971_v0 = vpop.f32.mrf.mxu1 }
 0x145   :  { %v213_v1 = vmul.f32 1.442695, %v208_v63  ;;  %v204_v44 = vmax.f32 %v189_v43, 0.0 }
 0x146   :  { %v1293_v2 = vpop.f32.mrf.mxu1 }
 0x147   :  { %1077 = vpow2.f32 %v213_v1  ;;  %v209_v47 = vsub.f32 0.0, %v204_v44  ;;  %v192_v19 = vadd.f32 %v1293_v2, %v1288_v55 }
 0x148   :  { %v972_v4 = vpop.f32.mrf.mxu1 }
 0x149   :  { %v215_v52 = vmul.f32 1.442695, %v209_v47  ;;  %v205_v20 = vmax.f32 %v192_v19, 0.0 }
 0x14a   :  { %v1295_v5 = vpop.f32.mrf.mxu1  ;;  %v232_v8 = vpop.permute.xlu1 %231 }
 0x14b   :  { %v234_v11 = vmul.f32 %v1076_v10, %v232_v8  ;;  %v210_v26 = vsub.f32 0.0, %v205_v20 }
 0x14c   :  { %v975_v6 = vpop.f32.mrf.mxu1 }
 0x14e   :  { %v1297_v7 = vpop.f32.mrf.mxu1 }
 0x150   :  { %v976_v9 = vpop.f32.mrf.mxu1 }
 0x154   :  { %v1078_v13 = vpop.eup %1077 }
 0x155   :  { %v1299_v16 = vmul.f32 %v1078_v13, %v234_v11 }
 0x157   :  { %v236_v17 = vpack.c.bf16 %v1299_v16, %v1299_v16  ;;  %288 = vrot.lane.b32.xlu1 %v1299_v16, %s1141_s24 }
 0x159   :  { %982 = vmatmul.mubr.msk.bf16.vlgmr.msra.gmra.mxu0 %vm237_vm2, %v236_v17 }
 0x15a   :  { %994 = vmatpush3.bf16.msra.mxu0 %v1268_v42  ;;  %997 = vmatprep.mubr.msk.bf16.mxu0 %vm1140_vm0, %v1139_v3 }
 0x15b   :  { %298 = vrot.lane.b32.xlu1 %v1283_v50, %s1142_s4  ;;  %995 = vmatprep.subr.bf16.mxu0 %v1139_v3 }
 0x15e   :  { %996 = vmatpush3.bf16.msra.mxu0 %v1283_v50 }
 0x15f   :  { %305 = vrot.lane.b32.xlu1 %v108_v18, %s1142_s4  ;;  %1009 = vmatprep.subr.bf16.mxu0 %v1139_v3 }
 0x1c9   :  { %v289_v28 = vpop.permute.xlu1 %288 }
 0x1cd   :  { %v1326_v29 = vpop.permute.xlu1 %298 }
 0x1ce   :  { %988 = vmatpush3.bf16.msra.mxu1 %v1326_v29 }
 0x1cf   :  { %1001 = vmatprep.subr.bf16.mxu1 %v1139_v3 }
 0x1d1   :  { %v306_v45 = vpop.permute.xlu1 %305 }
 0x219   :  { %v275_v30 = vpop.f32.mrf.mxu0 }
 0x21a   :  { %v276_v31 = vadd.f32 %v275_v30, %v108_v18 }
 0x21b   :  { %v983_v32 = vpop.f32.mrf.mxu0 }
 0x21c   :  { %v893_v33 = vmul.f32 -1.442695, %v276_v31  ;;  %v217_v32 = vmul.f32 1.442695, %v210_v26 }
 0x21d   :  { %v278_v34 = vpop.f32.mrf.mxu0 }
 0x21e   :  { %1079 = vpow2.f32 %v893_v33 }
 0x21f   :  { %v984_v35 = vpop.f32.mrf.mxu0 }
 0x22b   :  { %v1080_v36 = vpop.eup %1079 }
 0x22c   :  { %v284_v37 = vadd.f32 1.0, %v1080_v36 }
 0x22e   :  { %1081 = vrcp.f32 %v284_v37 }
 0x23b   :  { %v1082_v38 = vpop.eup %1081 }
 0x23c   :  { %v291_v39 = vmul.f32 %v1082_v38, %v289_v28 }
 0x23e   :  { %v292_v40 = vpack.c.bf16 %v291_v39, %v291_v39 }
 0x240   :  { %294 = vrot.lane.b32.xlu0 %v292_v40, %s1143_s8  ;;  %v116_v40 = vadd.f32 %v1316_v21, %v1202_v15 }
 0x2b2   :  { %v295_v41 = vpop.permute.xlu0 %294 }
 0x2b3   :  { %990 = vmatmul.mubr.msk.bf16.vlgmr.msra.gmra.mxu1 %vm237_vm2, %v295_v41 }
 0x2b4   :  { %1002 = vmatpush3.bf16.msra.mxu1 %v1322_v27  ;;  %1005 = vmatprep.mubr.msk.bf16.mxu1 %vm1140_vm0, %v1139_v3 }
 0x2b5   :  { %1003 = vmatprep.subr.bf16.mxu1 %v1139_v3 }
 0x2b8   :  { %1004 = vmatpush3.bf16.msra.mxu1 %v1326_v29 }
 0x2b9   :  { %1017 = vmatprep.subr.bf16.mxu1 %v1139_v3 }
 0x373   :  { %v345_v46 = vpop.f32.mrf.mxu1 }
 0x374   :  { %v346_v48 = vadd.f32 %v345_v46, %v306_v45 }
 0x375   :  { %v991_v49 = vpop.f32.mrf.mxu1 }
 0x376   :  { %1083 = vtanh.f32 %v346_v48 }
 0x377   :  { %v348_v51 = vpop.f32.mrf.mxu1  ;;  %1085 = vpow2.f32 %v215_v52 }
 0x379   :  { %v992_v53 = vpop.f32.mrf.mxu1 }
 0x383   :  { %v1084_v54 = vpop.eup %1083 }
 0x384   :  { %v352_v56 = vsub.f32 %v1084_v54, %v1299_v16  ;;  %v1086_v59 = vpop.eup %1085 }
 0x386   :  { %v353_v57 = vmul.f32 %v1082_v38, %v352_v56  ;;  %v197_v56 = vadd.f32 %v1295_v5, %v1288_v55 }
 0x388   :  { %v354_v58 = vadd.f32 %v353_v57, %v1299_v16  ;;  %v206_v57 = vmax.f32 %v197_v56, 0.0 }
 0x38a   :  { %v355_v60 = vmul.f32 %v1086_v59, %v354_v58 }
 0x38c   :  { %407 = vrot.lane.b32.xlu0 %v355_v60, %s1141_s24  ;;  %v356_v61 = vpack.c.bf16 %v355_v60, %v355_v60 }
 0x38e   :  { %998 = vmatmul.mubr.msk.bf16.vlgmr.msra.gmra.mxu0 %vm237_vm2, %v356_v61 }
 0x38f   :  { %1010 = vmatpush3.bf16.msra.mxu0 %v1268_v42  ;;  %1013 = vmatprep.mubr.msk.bf16.mxu0 %vm1140_vm0, %v1139_v3 }
 0x390   :  { %416 = vrot.lane.b32.xlu0 %v113_v62, %s1142_s4  ;;  %1011 = vmatprep.subr.bf16.mxu0 %v1139_v3 }
 0x393   :  { %1012 = vmatpush3.bf16.msra.mxu0 %v1283_v50 }
 0x394   :  { %1025 = vmatprep.subr.bf16.mxu0 %v1139_v3 }
 0x3fe   :  { %v408_v13 = vpop.permute.xlu0 %407 }
 0x402   :  { %v417_v22 = vpop.permute.xlu0 %416 }
 0x44e   :  { %v394_v63 = vpop.f32.mrf.mxu0 }
 0x44f   :  { %v395_v0 = vadd.f32 %v394_v63, %v113_v62 }
 0x450   :  { %v999_v1 = vpop.f32.mrf.mxu0 }
 0x451   :  { %v896_v4 = vmul.f32 -1.442695, %v395_v0 }
 0x452   :  { %v397_v6 = vpop.f32.mrf.mxu0 }
 0x453   :  { %1087 = vpow2.f32 %v896_v4 }
 0x454   :  { %v1000_v8 = vpop.f32.mrf.mxu0 }
 0x460   :  { %v1088_v9 = vpop.eup %1087 }
 0x461   :  { %v403_v10 = vadd.f32 1.0, %v1088_v9 }
 0x463   :  { %1089 = vrcp.f32 %v403_v10 }
 0x470   :  { %v1090_v11 = vpop.eup %1089 }
 0x471   :  { %v410_v16 = vmul.f32 %v1090_v11, %v408_v13  ;;  %v121_v13 = vadd.f32 %v1318_v23, %v1202_v15 }
 0x473   :  { %v411_v17 = vpack.c.bf16 %v410_v16, %v410_v16 }
 0x475   :  { %413 = vrot.lane.b32.xlu1 %v411_v17, %s1143_s8 }
 0x4e7   :  { %v414_v18 = vpop.permute.xlu1 %413 }
 0x4e8   :  { %1006 = vmatmul.mubr.msk.bf16.vlgmr.msra.gmra.mxu1 %vm237_vm2, %v414_v18 }
 0x4e9   :  { %1018 = vmatpush3.bf16.msra.mxu1 %v1322_v27  ;;  %1021 = vmatprep.mubr.msk.bf16.mxu1 %vm1140_vm0, %v1139_v3 }
 0x4ea   :  { %1019 = vmatprep.subr.bf16.mxu1 %v1139_v3 }
 0x4ed   :  { %1020 = vmatpush3.bf16.msra.mxu1 %v1326_v29 }
 0x4ee   :  { %1033 = vmatprep.subr.bf16.mxu1 %v1139_v3 }
 0x5a8   :  { %v456_v24 = vpop.f32.mrf.mxu1 }
 0x5a9   :  { %v457_v28 = vadd.f32 %v456_v24, %v417_v22 }
 0x5aa   :  { %v1007_v30 = vpop.f32.mrf.mxu1 }
 0x5ab   :  { %1091 = vtanh.f32 %v457_v28 }
 0x5ac   :  { %v459_v31 = vpop.f32.mrf.mxu1  ;;  %1093 = vpow2.f32 %v217_v32 }
 0x5ae   :  { %v1008_v33 = vpop.f32.mrf.mxu1 }
 0x5af   :  { %v200_v33 = vadd.f32 %v1297_v7, %v1288_v55  ;;  %v124_v7 = vadd.f32 %v1320_v25, %v1202_v15 }
 0x5b8   :  { %v1092_v34 = vpop.eup %1091 }
 0x5b9   :  { %v463_v35 = vsub.f32 %v1092_v34, %v355_v60  ;;  %v1094_v38 = vpop.eup %1093  ;;  %v207_v34 = vmax.f32 %v200_v33, 0.0 }
 0x5bb   :  { %v464_v36 = vmul.f32 %v1090_v11, %v463_v35 }
 0x5bd   :  { %v465_v37 = vadd.f32 %v464_v36, %v355_v60  ;;  %v211_v60 = vsub.f32 0.0, %v206_v57 }
 0x5bf   :  { %v466_v39 = vmul.f32 %v1094_v38, %v465_v37  ;;  %v219_v0 = vmul.f32 1.442695, %v211_v60  ;;  %v212_v37 = vsub.f32 0.0, %v207_v34 }
 0x5c1   :  { %518 = vrot.lane.b32.xlu1 %v466_v39, %s1141_s24  ;;  %v467_v2 = vpack.c.bf16 %v466_v39, %v466_v39 }
 0x5c3   :  { %1014 = vmatmul.mubr.msk.bf16.vlgmr.msra.gmra.mxu0 %vm237_vm2, %v467_v2 }
 0x5c4   :  { %1026 = vmatpush3.bf16.msra.mxu0 %v1268_v42  ;;  %1029 = vmatprep.mubr.msk.bf16.mxu0 %vm1140_vm0, %v1139_v3 }
 0x5c5   :  { %527 = vrot.lane.b32.xlu1 %v116_v40, %s1142_s4  ;;  %1027 = vmatprep.subr.bf16.mxu0 %v1139_v3 }
 0x5c8   :  { %1028 = vmatpush3.bf16.msra.mxu0 %v1283_v50 }
 0x5c9   :  { %1041 = vmatprep.subr.bf16.mxu0 %v1139_v3 }
 0x633   :  { %v519_v51 = vpop.permute.xlu1 %518 }
 0x637   :  { %v528_v58 = vpop.permute.xlu1 %527 }
 0x683   :  { %v505_v41 = vpop.f32.mrf.mxu0 }
 0x684   :  { %v506_v43 = vadd.f32 %v505_v41, %v116_v40  ;;  %v221_v40 = vmul.f32 1.442695, %v212_v37 }
 0x685   :  { %v1015_v44 = vpop.f32.mrf.mxu0 }
 0x686   :  { %v899_v45 = vmul.f32 -1.442695, %v506_v43 }
 0x687   :  { %v508_v21 = vpop.f32.mrf.mxu0 }
 0x688   :  { %1095 = vpow2.f32 %v899_v45 }
 0x689   :  { %v1016_v46 = vpop.f32.mrf.mxu0 }
 0x695   :  { %v1096_v47 = vpop.eup %1095 }
 0x696   :  { %v514_v48 = vadd.f32 1.0, %v1096_v47 }
 0x698   :  { %1097 = vrcp.f32 %v514_v48 }
 0x6a5   :  { %v1098_v49 = vpop.eup %1097 }
 0x6a6   :  { %v521_v52 = vmul.f32 %v1098_v49, %v519_v51 }
 0x6a8   :  { %v522_v53 = vpack.c.bf16 %v521_v52, %v521_v52 }
 0x6aa   :  { %524 = vrot.lane.b32.xlu0 %v522_v53, %s1143_s8 }
 0x71c   :  { %v525_v54 = vpop.permute.xlu0 %524 }
 0x71d   :  { %1022 = vmatmul.mubr.msk.bf16.vlgmr.msra.gmra.mxu1 %vm237_vm2, %v525_v54 }
 0x71e   :  { %1034 = vmatpush3.bf16.msra.mxu1 %v1322_v27  ;;  %1037 = vmatprep.mubr.msk.bf16.mxu1 %vm1140_vm0, %v1139_v3 }
 0x71f   :  { %1035 = vmatprep.subr.bf16.mxu1 %v1139_v3 }
 0x722   :  { %1036 = vmatpush3.bf16.msra.mxu1 %v1326_v29 }
 0x723   :  { %1049 = vmatprep.subr.bf16.mxu1 %v1139_v3 }
 0x7dd   :  { %v567_v59 = vpop.f32.mrf.mxu1 }
 0x7de   :  { %v568_v61 = vadd.f32 %v567_v59, %v528_v58 }
 0x7df   :  { %v1023_v62 = vpop.f32.mrf.mxu1 }
 0x7e0   :  { %1099 = vtanh.f32 %v568_v61  ;;  %v23_v61 = vld [vmem:[%s1429_s2 + $0x20] sm:$0xff]  ;;  %s1144_s2 = smov [#allocation2]  }
 0x7e1   :  { %v570_v63 = vpop.f32.mrf.mxu1  ;;  %1101 = vpow2.f32 %v219_v0  ;;  %v803_v62 = vrot.slane %v23_v61, %v58_v14  ;;  %s865_s11 = sshll.u32 %s1144_s2, 4  ;;  %s866_s11 = int_to_ptr.vmem [resolvable:$true] %s865_s11 }
 0x7e2   :  { %p1122_p1 = scmp.lt.s32.totalorder %s866_s11, %s866_s11 }
 0x7e3   :  { %v1024_v1 = vpop.f32.mrf.mxu1 }
 0x7ed   :  { %v1100_v4 = vpop.eup %1099 }
 0x7ee   :  { %v574_v6 = vsub.f32 %v1100_v4, %v466_v39  ;;  %v1102_v10 = vpop.eup %1101 }
 0x7f0   :  { %v575_v8 = vmul.f32 %v1098_v49, %v574_v6 }
 0x7f2   :  { %v576_v9 = vadd.f32 %v575_v8, %v466_v39 }
 0x7f4   :  { %v577_v11 = vmul.f32 %v1102_v10, %v576_v9 }
 0x7f6   :  { %629 = vrot.lane.b32.xlu0 %v577_v11, %s1141_s24  ;;  %v578_v5 = vpack.c.bf16 %v577_v11, %v577_v11 }
 0x7f8   :  { %1030 = vmatmul.mubr.msk.bf16.vlgmr.msra.gmra.mxu0 %vm237_vm2, %v578_v5 }
 0x7f9   :  { %1042 = vmatpush3.bf16.msra.mxu0 %v1268_v42  ;;  %1045 = vmatprep.mubr.msk.bf16.mxu0 %vm1140_vm0, %v1139_v3 }
 0x7fa   :  { %638 = vrot.lane.b32.xlu0 %v121_v13, %s1142_s4  ;;  %1043 = vmatprep.subr.bf16.mxu0 %v1139_v3 }
 0x7fd   :  { %1044 = vmatpush3.bf16.msra.mxu0 %v1283_v50 }
 0x7fe   :  { %1057 = vmatprep.subr.bf16.mxu0 %v1139_v3 }
 0x868   :  { %v630_v28 = vpop.permute.xlu0 %629 }
 0x86c   :  { %v639_v35 = vpop.permute.xlu0 %638 }
 0x8b8   :  { %v616_v16 = vpop.f32.mrf.mxu0 }
 0x8b9   :  { %v617_v17 = vadd.f32 %v616_v16, %v121_v13 }
 0x8ba   :  { %v1031_v18 = vpop.f32.mrf.mxu0 }
 0x8bb   :  { %v902_v19 = vmul.f32 -1.442695, %v617_v17 }
 0x8bc   :  { %v619_v23 = vpop.f32.mrf.mxu0 }
 0x8bd   :  { %1103 = vpow2.f32 %v902_v19 }
 0x8be   :  { %v1032_v20 = vpop.f32.mrf.mxu0 }
 0x8ca   :  { %v1104_v22 = vpop.eup %1103 }
 0x8cb   :  { %v625_v24 = vadd.f32 1.0, %v1104_v22 }
 0x8cd   :  { %1105 = vrcp.f32 %v625_v24 }
 0x8da   :  { %v1106_v26 = vpop.eup %1105 }
 0x8db   :  { %v632_v30 = vmul.f32 %v1106_v26, %v630_v28 }
 0x8dd   :  { %v633_v31 = vpack.c.bf16 %v632_v30, %v632_v30 }
 0x8df   :  { %635 = vrot.lane.b32.xlu1 %v633_v31, %s1143_s8 }
 0x951   :  { %v636_v32 = vpop.permute.xlu1 %635 }
 0x952   :  { %1038 = vmatmul.mubr.msk.bf16.vlgmr.msra.gmra.mxu1 %vm237_vm2, %v636_v32 }
 0x953   :  { %1050 = vmatpush3.bf16.msra.mxu1 %v1322_v27  ;;  %1053 = vmatprep.mubr.msk.bf16.mxu1 %vm1140_vm0, %v1139_v3 }
 0x954   :  { %1051 = vmatprep.subr.bf16.mxu1 %v1139_v3 }
 0x957   :  { %1052 = vmatpush3.bf16.msra.mxu1 %v1326_v29 }
 0xa12   :  { %v678_v36 = vpop.f32.mrf.mxu1 }
 0xa13   :  { %v679_v38 = vadd.f32 %v678_v36, %v639_v35 }
 0xa14   :  { %v1039_v39 = vpop.f32.mrf.mxu1 }
 0xa15   :  { %1107 = vtanh.f32 %v679_v38 }
 0xa16   :  { %v681_v2 = vpop.f32.mrf.mxu1  ;;  %1109 = vpow2.f32 %v221_v40 }
 0xa18   :  { %v1040_v27 = vpop.f32.mrf.mxu1 }
 0xa22   :  { %v1108_v41 = vpop.eup %1107 }
 0xa23   :  { %v685_v43 = vsub.f32 %v1108_v41, %v577_v11  ;;  %v1110_v21 = vpop.eup %1109 }
 0xa25   :  { %v686_v44 = vmul.f32 %v1106_v26, %v685_v43 }
 0xa27   :  { %v687_v45 = vadd.f32 %v686_v44, %v577_v11 }
 0xa29   :  { %v688_v29 = vmul.f32 %v1110_v21, %v687_v45 }
 0xa2b   :  { %740 = vrot.lane.b32.xlu1 %v688_v29, %s1141_s24  ;;  %v689_v55 = vpack.c.bf16 %v688_v29, %v688_v29 }
 0xa2d   :  { %1046 = vmatmul.mubr.msk.bf16.vlgmr.msra.gmra.mxu0 %vm237_vm2, %v689_v55 }
 0xa2e   :  { %1061 = vmatprep.mubr.msk.bf16.mxu0 %vm1140_vm0, %v1139_v3 }
 0xa2f   :  { %749 = vrot.lane.b32.xlu1 %v124_v7, %s1142_s4 }
 0xa33   :  { %804 = vrot.lane.b32.xlu1 %v1283_v50, %s1141_s24 }
 0xa9d   :  { %v741_v25 = vpop.permute.xlu1 %740 }
 0xaa1   :  { %v750_v58 = vpop.permute.xlu1 %749 }
 0xaa5   :  { %v805_v60 = vpop.permute.xlu1 %804 }
 0xaed   :  { %v727_v46 = vpop.f32.mrf.mxu0 }
 0xaee   :  { %v728_v47 = vadd.f32 %v727_v46, %v124_v7 }
 0xaef   :  { %v1047_v48 = vpop.f32.mrf.mxu0 }
 0xaf0   :  { %v905_v49 = vmul.f32 -1.442695, %v728_v47 }
 0xaf1   :  { %v730_v51 = vpop.f32.mrf.mxu0 }
 0xaf2   :  { %1111 = vpow2.f32 %v905_v49 }
 0xaf3   :  { %v1048_v52 = vpop.f32.mrf.mxu0 }
 0xaff   :  { %v1112_v53 = vpop.eup %1111 }
 0xb00   :  { %v736_v54 = vadd.f32 1.0, %v1112_v53 }
 0xb02   :  { %1113 = vrcp.f32 %v736_v54 }
 0xb0f   :  { %v1114_v15 = vpop.eup %1113 }
 0xb10   :  { %v743_v56 = vmul.f32 %v1114_v15, %v741_v25 }
 0xb12   :  { %v744_v57 = vpack.c.bf16 %v743_v56, %v743_v56 }
 0xb14   :  { %746 = vrot.lane.b32.xlu0 %v744_v57, %s1143_s8 }
 0xb18   :  { %806 = vrot.lane.b32.xlu0 %v1268_v42, %s1141_s24 }
 0xb1c   :  { %811 = vrot.lane.b32.xlu0 %v803_v62, %s1141_s24  ;;  %s1117_s24 = scalar_lea.vmem %s866_s11, 128 }
 0xb1d   :  { %p1118_p0 = scmp.ne.s32.totalorder %s866_s11, %s1117_s24  ;;  %p1123_p2 = scmp.lt.s32.totalorder %s1117_s24, %s1117_s24 }
 0xb1f   :  { %p1124_p3 = por %p1123_p2, %p1122_p1 }
 0xb21   :  { %p1125_p4 = pnand %p1124_p3, %p1118_p0 }
 0xb86   :  { %v747_v50 = vpop.permute.xlu0 %746 }
 0xb87   :  { %1054 = vmatmul.mubr.msk.bf16.vlgmr.msra.gmra.mxu1 %vm237_vm2, %v747_v50 }
 0xb8a   :  { %v807_v59 = vpop.permute.xlu0 %806 }
 0xb8b   :  { %1058 = vmatpush3.bf16.msra.mxu0 %v807_v59 }
 0xb8c   :  { %1059 = vmatprep.subr.bf16.mxu0 %v1139_v3 }
 0xb8e   :  { %v812_v11 = vpop.permute.xlu0 %811 }
 0xb8f   :  { %1060 = vmatpush3.bf16.msra.mxu0 %v805_v60 }
 0xc47   :  { %v789_v42 = vpop.f32.mrf.mxu1 }
 0xc48   :  { %v790_v63 = vadd.f32 %v789_v42, %v750_v58 }
 0xc49   :  { %v1055_v0 = vpop.f32.mrf.mxu1 }
 0xc4a   :  { %1115 = vtanh.f32 %v790_v63 }
 0xc4b   :  { %v792_v1 = vpop.f32.mrf.mxu1 }
 0xc4d   :  { %v1056_v4 = vpop.f32.mrf.mxu1 }
 0xc57   :  { %v1116_v6 = vpop.eup %1115 }
 0xc58   :  { %v796_v8 = vsub.f32 %v1116_v6, %v688_v29 }
 0xc5a   :  { %v797_v9 = vmul.f32 %v1114_v15, %v796_v8 }
 0xc5c   :  { %v798_v3 = vadd.f32 %v797_v9, %v688_v29 }
 0xc5e   :  { %v799_v10 = vpack.c.bf16 %v798_v3, %v798_v3 }
 0xc60   :  { %1062 = vmatmul.mubr.msk.bf16.vlgmr.msra.gmra.mxu0 %vm237_vm2, %v799_v10 }
 0xd20   :  { %v851_v12 = vpop.f32.mrf.mxu0 }
 0xd21   :  { %v852_v14 = vadd.f32 %v851_v12, %v812_v11 }
 0xd22   :  { %v1063_v5 = vpop.f32.mrf.mxu0 }
 0xd23   :  { %858 = vst.msk [vmem:[#allocation2] sm:$0xff] %vm857_vm3, %v852_v14 }
 0xd24   :  { %v854_v13 = vpop.f32.mrf.mxu0 }
 0xd25   :  { %1128 = shalt.err (!%p1125_p4)
}
 0xd26   :  { %868 = dma.vmem_to_hbm [thread:$0]  %s866_s11, 128, %s1430_s3, [#allocation3]   ;;  %v1064_v16 = vpop.f32.mrf.mxu0 }
 0xd27   :  { %1137 = dma.done.wait [#allocation3], 128  }
 0xd28   :  { %1138 = vsyncadd [#allocation3], 4294967168 }
 0xd29   :  { %872 = vsyncpa [#allocation3], 1 }

</bundles_post_ra>
